<compile_context>
chip_gen: v7x
topology: tpu7x:2x2x1
jax: 0.10.0
libtpu: 0.0.40
codegen_flags: <defaults>
</compile_context>

<pallas_src>
import numpy as np
import jax
import jax.numpy as jnp
from jax.experimental import pallas as pl
from jax.experimental.pallas import tpu as pltpu


def _round_up(x: int, m: int) -> int:
    return ((x + m - 1) // m) * m


def _cdiv(a: int, b: int) -> int:
    return -(-a // b)


def _choose_tiling(ll: int, max_tile_ll: int = 4096):
    """Pick (tile, grid, ll_pad) for the flattened L*L axis.

    tile is a 128-multiple <= max_tile_ll; we aim for an even grid >= 2 so the
    'parallel' axis can shard across v7x's two TensorCores.  For tiny problems
    (ll <= 128) grid may collapse to 1, which is unavoidable at 128-lane tiles.
    """
    g = 2
    while _round_up(_cdiv(ll, g), 128) > max_tile_ll:
        g += 2
    tile = _round_up(_cdiv(ll, g), 128)
    grid = _cdiv(ll, tile)          # actual number of tiles (ragged last block)
    ll_pad = grid * tile
    return tile, grid, ll_pad


# ----------------------------------------------------------------------------
# Pallas kernel: out[:, tile] = hi_T @ onehot + lo_T @ onehot   (MXU gather)
# ----------------------------------------------------------------------------
def _rel_pos_gather_kernel(idx_ref, hi_t_ref, lo_t_ref, out_ref):
    # idx_ref:  (1, TILE) int32     -- flattened relative_position_index tile (padded with 0)
    # hi_t_ref: (H, D)    bfloat16  -- bf16(table), pre-transposed
    # lo_t_ref: (H, D)    bfloat16  -- bf16(table - f32(bf16(table))), pre-transposed
    # out_ref:  (H, TILE) float32   -- gathered bias, lane-dense output
    d = hi_t_ref.shape[1]
    tile = idx_ref.shape[1]
    idx = idx_ref[...]                                              # (1, TILE)
    iota = jax.lax.broadcasted_iota(jnp.int32, (d, tile), 0)        # (D, TILE)
    onehot = (iota == idx).astype(jnp.bfloat16)                     # bf16: half the footprint
    hi_mm = jnp.dot(hi_t_ref[...], onehot, preferred_element_type=jnp.float32)
    lo_mm = jnp.dot(lo_t_ref[...], onehot, preferred_element_type=jnp.float32)
    out_ref[...] = hi_mm + lo_mm                                    # exact-enough f32 reconstruction


# ----------------------------------------------------------------------------
# Wrapper
# ----------------------------------------------------------------------------
def relative_position_bias_forward(bias_table, idx_row, *, L, tile, grid):
    """Pallas-backed equivalent of BeitRelativePositionBias.forward() (add_k_prompts == 0).

    bias_table: (num_relative_distance, num_heads) float32 parameter table
    idx_row:    (1, grid*tile) int32, flattened relative_position_index zero-padded
                (built once with numpy by prepare_index_inputs)
    returns:    (num_heads, L, L) float32

    NOTE: the output depends only on the parameter table (the index is a compile-time
    constant) -- cache the result per weight update at the call site instead of
    re-launching per attention layer / forward step.
    """
    D, H = bias_table.shape
    LL = L * L

    # Exact-enough hi/lo bf16 split of the f32 table (done once; tiny arrays).
    table_f32 = bias_table.astype(jnp.float32)
    hi = table_f32.astype(jnp.bfloat16)
    lo = (table_f32 - hi.astype(jnp.float32)).astype(jnp.bfloat16)
    hi_t = hi.T                                                     # (H, D)
    lo_t = lo.T                                                     # (H, D)

    cost = pl.CostEstimate(
        flops=2 * 2 * LL * D * H,                 # two bf16 matmuls
        transcendentals=0,
        bytes_accessed=grid * tile * 4 + 2 * D * H * 2 + LL * H * 4,
    )

    gathered = pl.pallas_call(
        _rel_pos_gather_kernel,
        # Emit (H, LL) directly: only the ragged last block gets a masked store,
        # and the wrapper-side slice copy is gone.
        out_shape=jax.ShapeDtypeStruct((H, LL), jnp.float32),
        grid=(grid,),
        in_specs=[
            pl.BlockSpec((1, tile), lambda i: (0, i),
                         memory_space=pltpu.MemorySpace.VMEM),
            # Table blocks are block-constant (index_map -> (0,0)); double-buffering
            # them costs only a few KB, so the default pipelining is accepted.
            pl.BlockSpec((H, D), lambda i: (0, 0),
                         memory_space=pltpu.MemorySpace.VMEM),
            pl.BlockSpec((H, D), lambda i: (0, 0),
                         memory_space=pltpu.MemorySpace.VMEM),
        ],
        out_specs=pl.BlockSpec((H, tile), lambda i: (0, i),
                               memory_space=pltpu.MemorySpace.VMEM),
        compiler_params=pltpu.CompilerParams(
            dimension_semantics=("parallel",),   # shards the tile axis across v7x's 2 TCs
            # 32 MiB is safe on every generation (v7x: 64 MiB physical per TC) and
            # comfortably fits tile=4096 (bf16 one-hot ~6 MB at BEiT-base D~732).
            vmem_limit_bytes=32 * 1024 * 1024,
        ),
        cost_estimate=cost,
    )(idx_row, hi_t, lo_t)

    return gathered.reshape(H, L, L)             # free: already (H, LL) lane-dense


# ----------------------------------------------------------------------------
# Buffer construction (mirrors BeitRelativePositionBias.__init__) -- all numpy,
# computed once at build time.
# ----------------------------------------------------------------------------
def build_relative_position_index(window_size):
    wh, ww = window_size
    num_relative_distance = (2 * wh - 1) * (2 * ww - 1) + 3

    coords_h = np.arange(wh)
    coords_w = np.arange(ww)
    coords = np.stack(np.meshgrid(coords_h, coords_w, indexing="ij"))        # (2, wh, ww)
    coords_flatten = coords.reshape(2, -1)                                    # (2, N)
    relative_coords = coords_flatten[:, :, None] - coords_flatten[:, None, :]  # (2, N, N)
    relative_coords = relative_coords.transpose(1, 2, 0).copy()               # (N, N, 2)
    relative_coords[:, :, 0] += wh - 1
    relative_coords[:, :, 1] += ww - 1
    relative_coords[:, :, 0] *= 2 * ww - 1

    N = wh * ww
    rel_pos_index = np.zeros((N + 1, N + 1), dtype=np.int32)
    rel_pos_index[1:, 1:] = relative_coords.sum(-1)
    rel_pos_index[0, 0:] = num_relative_distance - 3
    rel_pos_index[0:, 0] = num_relative_distance - 2
    rel_pos_index[0, 0] = num_relative_distance - 1
    return rel_pos_index, num_relative_distance


def prepare_index_inputs(rel_pos_index_np, *, max_tile_ll=4096):
    """Precompute the zero-padded flat index row (numpy) and the tiling parameters."""
    L = rel_pos_index_np.shape[0]
    LL = L * L
    tile, grid, ll_pad = _choose_tiling(LL, max_tile_ll)
    idx_row_np = np.zeros((1, ll_pad), dtype=np.int32)
    idx_row_np[0, :LL] = rel_pos_index_np.reshape(-1)
    # Padded entries gather table row 0 inside the kernel, but the padded output
    # columns are never stored (masked ragged last block), so they are harmless.
    return jnp.asarray(idx_row_np), tile, grid, L


if __name__ == "__main__":
    # Small, deterministic configuration.
    window_size = (4, 4)          # -> L = 17 tokens (16 patches + CLS), LL = 289
    num_attention_heads = 8
    # TODO(synk): add_k_prompts > 0 prompt_bias_table path not implemented
    #             (config default is k = 0).

    rel_pos_index_np, num_relative_distance = build_relative_position_index(window_size)
    idx_row, tile, grid, L = prepare_index_inputs(rel_pos_index_np)

    key = jax.random.PRNGKey(0)
    # PyTorch initializes the table to zeros; use deterministic random values
    # instead so the kernel output is non-trivial.
    bias_table = jax.random.normal(
        key, (num_relative_distance, num_attention_heads), dtype=jnp.float32) * 0.02

    out = relative_position_bias_forward(bias_table, idx_row, L=L, tile=tile, grid=grid)
    out = jax.block_until_ready(out)

    # Reference check (plain JAX gather), mirrors the PyTorch forward exactly.
    ref = jnp.take(bias_table, jnp.asarray(rel_pos_index_np).reshape(-1), axis=0)
    ref = jnp.transpose(ref.reshape(L, L, num_attention_heads), (2, 0, 1))

    assert out.shape == (num_attention_heads, L, L), out.shape
    assert out.dtype == jnp.float32
    np.testing.assert_allclose(np.asarray(out), np.asarray(ref), rtol=1e-6, atol=1e-6)

    print("KERNEL_OK")
</pallas_src>

<mosaic_0001>
module attributes {stable_mosaic.version = 11 : i64} {
  func.func @_rel_pos_gather_kernel(%arg0: i32, %arg1: memref<1x256xi32, #tpu.memory_space<vmem>>, %arg2: memref<8x52xbf16, #tpu.memory_space<vmem>>, %arg3: memref<8x52xbf16, #tpu.memory_space<vmem>>, %arg4: memref<8x256xf32, #tpu.memory_space<vmem>>) attributes {dimension_semantics = [#tpu.dimension_semantics<parallel>], iteration_bounds = array<i64: 2>, scalar_prefetch = 0 : i64, scratch_operands = 0 : i64, tpu.core_type = #tpu.core_type<tc>, window_params = [{transform_indices = @transform_0, window_bounds = array<i64: 1, 256>}, {pipeline_mode = #tpu.pipeline_mode<synchronous>, transform_indices = @transform_1, window_bounds = array<i64: 8, 52>}, {pipeline_mode = #tpu.pipeline_mode<synchronous>, transform_indices = @transform_2, window_bounds = array<i64: 8, 52>}, {transform_indices = @transform_3, window_bounds = array<i64: 8, 256>}]} {
    %c0 = arith.constant 0 : index
    %c0_0 = arith.constant 0 : index
    %0 = vector.load %arg1[%c0, %c0_0] : memref<1x256xi32, #tpu.memory_space<vmem>>, vector<1x256xi32>
    %1 = tpu.iota {dimensions = array<i32: 0>} : vector<52x256xi32>
    %2 = vector.broadcast %0 : vector<1x256xi32> to vector<52x256xi32>
    %3 = arith.cmpi eq, %1, %2 : vector<52x256xi32>
    %4 = arith.extui %3 : vector<52x256xi1> to vector<52x256xi32>
    %5 = arith.sitofp %4 : vector<52x256xi32> to vector<52x256xf32>
    %6 = arith.truncf %5 : vector<52x256xf32> to vector<52x256xbf16>
    %c0_1 = arith.constant 0 : index
    %c0_2 = arith.constant 0 : index
    %7 = vector.load %arg2[%c0_1, %c0_2] : memref<8x52xbf16, #tpu.memory_space<vmem>>, vector<8x52xbf16>
    %cst = arith.constant dense<0.000000e+00> : vector<8x256xf32>
    %8 = tpu.matmul %7, %6, %cst {dimension_numbers = #tpu.dot_dimension_numbers<[1], [0], [0], [1], [0, 0, 1, 1], [], []>} : vector<8x52xbf16>, vector<52x256xbf16>, vector<8x256xf32> -> vector<8x256xf32>
    %c0_3 = arith.constant 0 : index
    %c0_4 = arith.constant 0 : index
    %9 = vector.load %arg3[%c0_3, %c0_4] : memref<8x52xbf16, #tpu.memory_space<vmem>>, vector<8x52xbf16>
    %cst_5 = arith.constant dense<0.000000e+00> : vector<8x256xf32>
    %10 = tpu.matmul %9, %6, %cst_5 {dimension_numbers = #tpu.dot_dimension_numbers<[1], [0], [0], [1], [0, 0, 1, 1], [], []>} : vector<8x52xbf16>, vector<52x256xbf16>, vector<8x256xf32> -> vector<8x256xf32>
    %11 = arith.addf %8, %10 : vector<8x256xf32>
    %c0_6 = arith.constant 0 : index
    %c0_7 = arith.constant 0 : index
    %12 = vector.load %arg4[%c0_6, %c0_7] : memref<8x256xf32, #tpu.memory_space<vmem>>, vector<8x256xf32>
    tpu.vector_store %arg4[%c0_6, %c0_7], %11 {strides = array<i32>} : memref<8x256xf32, #tpu.memory_space<vmem>>, vector<8x256xf32>,
    return
  }
  func.func @transform_0(%arg0: i32) -> (i32, i32) {
    %c0_i32 = arith.constant 0 : i32
    %c0_i32_0 = arith.constant 0 : i32
    return %c0_i32, %arg0 : i32, i32
  }
  func.func @transform_1(%arg0: i32) -> (i32, i32) {
    %c0_i32 = arith.constant 0 : i32
    %c0_i32_0 = arith.constant 0 : i32
    %c0_i32_1 = arith.constant 0 : i32
    return %c0_i32, %c0_i32_0 : i32, i32
  }
  func.func @transform_2(%arg0: i32) -> (i32, i32) {
    %c0_i32 = arith.constant 0 : i32
    %c0_i32_0 = arith.constant 0 : i32
    %c0_i32_1 = arith.constant 0 : i32
    return %c0_i32, %c0_i32_0 : i32, i32
  }
  func.func @transform_3(%arg0: i32) -> (i32, i32) {
    %c0_i32 = arith.constant 0 : i32
    %c0_i32_0 = arith.constant 0 : i32
    return %c0_i32, %arg0 : i32, i32
  }
}

</mosaic_0001>

<bundles_post_ra>
// kernel: tpu_custom_call.1
= control target key start
LH: loop header
LB: loop body
LE: loop exit
PB: predicated region body
PF: predicated region fallthrough
CT: control target
= control target key end

     0   :  { %8 = vsyncpa [#allocation3], 0  ;;  %s970_s0 = inlined_call_operand.hbm [shape: s32[1,512], index: 0, kind: input, shape index: {}]   ;;  %s971_s1 = inlined_call_operand.hbm [shape: bf16[8,52], index: 1, kind: input, shape index: {}]   ;;  %s972_s2 = inlined_call_operand.vmem [shape: bf16[8,52], index: 2, kind: input, shape index: {}]   ;;  %s973_s3 = inlined_call_operand.hbm [shape: f32[8,289], index: 3, kind: output, shape index: {}]  }
   0x1   :  { %10 = vsyncpa [#allocation3 + $0x1], 0 }
   0x2   :  { %11 = vsyncpa [#allocation6], 0 }
   0x3   :  { %12 = vsyncpa [#allocation4], 0 }
   0x4   :  { %14 = vsyncpa [#allocation4 + $0x1], 0  ;;  %s756_s12 = smov 0   ;;  %s758_s13 = smov 0  }
   0x5   :  { %s760_s14 = smov 0   ;;  %s762_s15 = smov 0  }
   0x6 LB: > { %s777_s16 = sadd.s32 4294967295, %s728_s15   ;;  %s475_s17 = sadd.s32 4294967294, %s728_s15   ;;  %s728_s15 = sphi %s762_s15, %s997_s15   ;;  %s724_s14 = sphi %s760_s14, %s996_s14   ;;  %s720_s13 = sphi %s758_s13, %s995_s13   ;;  %s716_s12 = sphi %s756_s12, %s994_s12  }
   0x7   : > { %p40_p0 = scmp.ne.s32.totalorder %s720_s13, %s716_s12  ;;  %p974_p1 = scmp.eq.s32.totalorder %s777_s16, 0 }
   0x8   : > { %p112_p3 = scmp.eq.s32.totalorder %s475_s17, 1  ;;  %p476_p5 = scmp.ge.s32.totalorder %s728_s15, 1 }
   0x9   : > { %p786_p4 = por %p974_p1, %p40_p0  ;;  %p119_p7 = scmp.lt.s32.totalorder %s728_s15, 3 }
   0xa   : > { %p791_p6 = por %p112_p3, %p40_p0  ;;  %s730_s21 = smov [#allocation5]  }
   0xb   : > { %s977_s18 = scalar_select %p786_p4, 1, 0 }
   0xc   : > { %s978_s19 = scalar_select %p791_p6, 1, 0 }
   0xd   : > { %p796_p8 = pnand %p476_p5, %p119_p7  ;;  %s132_s22 = sshll.u32 %s730_s21, 4  ;;  %s133_s22 = int_to_ptr.vmem [resolvable:$true] %s132_s22 }
   0xe   : > { %s804_s23 = sadd.s32 1, %s728_s15   ;;  %s27_s27 = sadd.s32 1, %s724_s14 }
   0xf   : > { %s979_s20 = scalar_select %p796_p8, 1, 0 }
  0x10   : > { %p548_p10 = pneg %p796_p8  ;;  %s24_s25 = ssub.s32 %s728_s15, %s804_s23 }
  0x11   : > { %p814_p12 = scmp.eq.s32.totalorder %s24_s25, 0  ;;  %s600_s30 = scalar_lea.hbm %s971_s1, 64 }
  0x12   : > { %p808_p11 = pnand %p548_p10, %p974_p1  ;;  %p601_p0 = scmp.ne.s32.totalorder %s971_s1, %s600_s30 }
  0x13   : > { %s981_s26 = scalar_select %p814_p12, 1, 0 }
  0x14   : > { %p602_p3 = pneg %p808_p11  ;;  %p607_p10 = scmp.lt.u32.totalorder %s600_s30, %s971_s1 }
  0x16   : > { %p603_p5 = pnand %p602_p3, %p601_p0 }
  0x18   : > { %p604_p7 = pneg %p603_p5 }
  0x1a   : > { %p609_p9 = pnand %p607_p10, %p604_p7 }
  0x1c   : > { %612 = shalt.err (!%p609_p9)
}
  0x1d   : > { %s613_s8 = scalar_lea.vmem %s133_s22, 64  ;;  %p621_p6 = scmp.lt.s32.totalorder %s133_s22, %s133_s22 }
  0x1e   : > { %p614_p1 = scmp.ne.s32.totalorder %s133_s22, %s613_s8  ;;  %p622_p4 = scmp.lt.s32.totalorder %s613_s8, %s613_s8 }
  0x20   : > { %p616_p2 = pnand %p614_p1, %p602_p3  ;;  %p623_p8 = por %p622_p4, %p621_p6 }
  0x22   : > { %p617_p13 = pneg %p616_p2 }
  0x24   : > { %p624_p12 = pnand %p623_p8, %p617_p13 }
  0x26   : > { %627 = shalt.err (!%p624_p12)
}
  0x27   : > { %551 = dma.hbm_to_vmem [thread:$0]  (!%p808_p11), %s971_s1, 64, %s133_s22, [#allocation6]  }
  0x28   : > { %p982_p1 = scmp.ne.s32.totalorder %s981_s26, 0  ;;  %p35_p2 = scmp.eq.s32.totalorder %s728_s15, 0 }
  0x29   : > { %p983_p4 = scmp.ne.s32.totalorder %s724_s14, %s720_s13  ;;  %p984_p6 = scmp.eq.s32.totalorder %s777_s16, 1 }
  0x2a   : > { %s840_s11 = scalar_select %p982_p1, %s724_s14, %s27_s27  }
  0x2b   : > { %p848_p8 = por %p984_p6, %p983_p4  ;;  %p561_p9 = scmp.lt.s32.totalorder %s728_s15, 2 }
  0x2c   : > { %s146_s21 = sand.u32 1, %s724_s14   ;;  %p986_p12 = pmov %p983_p4 }
  0x2d   : > { %s479_s24 = sshll.u32 %s146_s21, 1  ;;  %s537_s25 = sshll.u32 %s728_s15, 5 }
  0x2e   : > { %p36_p13 = por %p35_p2, %p986_p12  ;;  %s861_s22 = scalar_lea.hbm %s970_s0, %s537_s25 }
  0x2f   : > { %s150_s26 = scalar_lea.vmem [#allocation2], %s479_s24  ;;  %s147_s4 = scalar_lea.sflag [#allocation3], %s146_s21 }
  0x30   : > { %s158_s27 = sshll.u32 %s150_s26, 4  ;;  %p863_p11 = pnand %p561_p9, %p36_p13  ;;  %s867_s27 = int_to_ptr.vmem [resolvable:$true] %s158_s27 }
  0x31   : > { %s628_s5 = scalar_lea.hbm %s861_s22, 32  ;;  %s633_s8 = scalar_lea.hbm %s970_s0, 64 }
  0x32   : > { %p629_p0 = scmp.ne.s32.totalorder %s861_s22, %s628_s5  ;;  %p630_p3 = pneg %p863_p11 }
  0x33   : > { %p634_p10 = scmp.lt.u32.totalorder %s861_s22, %s970_s0  ;;  %p635_p1 = scmp.lt.u32.totalorder %s633_s8, %s628_s5 }
  0x34   : > { %p631_p5 = pnand %p630_p3, %p629_p0  ;;  %p637_p4 = scmp.lt.u32.totalorder %s628_s5, %s861_s22 }
  0x35   : > { %p636_p2 = por %p635_p1, %p634_p10 }
  0x36   : > { %p632_p7 = pneg %p631_p5 }
  0x37   : > { %p638_p6 = por %p637_p4, %p636_p2 }
  0x39   : > { %p639_p9 = pnand %p638_p6, %p632_p7 }
  0x3b   : > { %642 = shalt.err (!%p639_p9)
}
  0x3c   : > { %s643_s21 = scalar_lea.vmem %s867_s27, 32  ;;  %s731_s24 = smov [#allocation2]  }
  0x3d   : > { %p644_p12 = scmp.ne.s32.totalorder %s867_s27, %s643_s21  ;;  %s648_s25 = sshll.u32 %s731_s24, 4  ;;  %s649_s25 = int_to_ptr.vmem [resolvable:$false] %s648_s25 }
  0x3e   : > { %s650_s28 = scalar_lea.vmem %s649_s25, 64  ;;  %p651_p5 = scmp.lt.s32.totalorder %s867_s27, %s649_s25 }
  0x3f   : > { %p646_p13 = pnand %p644_p12, %p630_p3  ;;  %p652_p10 = scmp.lt.s32.totalorder %s650_s28, %s643_s21 }
  0x41   : > { %p647_p0 = pneg %p646_p13  ;;  %p653_p1 = por %p652_p10, %p651_p5 }
  0x43   : > { %p654_p2 = pnand %p653_p1, %p647_p0 }
  0x45   : > { %657 = shalt.err (!%p654_p2)
}
  0x46   : > { %555 = dma.hbm_to_vmem [thread:$0]  (!%p863_p11), %s861_s22, 32, %s867_s27, %s147_s4  }
  0x47   : > { %p988_p7 = scmp.ne.s32.totalorder %s979_s20, 0 }
  0x48   : > { %s897_s29 = sand.u32 (!%p988_p7), 1, %s720_s13   ;;  %p989_p3 = scmp.ne.s32.totalorder (!%p988_p7), %s977_s18, 0 }
  0x49   : > { %167 = sbr.rel (%p988_p7) target bundleno = 353 (0x161), region = 32  ;;  %s483_s26 = sshll.u32 (!%p988_p7), %s897_s29, 1 }
  0x4a   : > { %s170_s5 = scalar_lea.sflag (!%p988_p7), [#allocation3], %s897_s29  ;;  %s173_s6 = scalar_lea.vmem (!%p988_p7), [#allocation2], %s483_s26 }
  0x50   : > { %703 = dma.done.wait (%p989_p3), %s170_s5, 32  }
  0x51   : > { %705 = vsyncadd (%p989_p3), %s170_s5, 4294967264  ;;  %p990_p4 = scmp.eq.s32.totalorder %s777_s16, 0 }
  0x53   : > { %707 = dma.done.wait (%p990_p4), [#allocation6], 64   ;;  %p991_p11 = pmov %p990_p4 }
  0x54   : > { %v208_v0 = vlaneseq  ;;  %v732_v2 = vmov 0   ;;  %v207_v6 = vld [vmem:[%s173_s6] sm:$0x3]  ;;  %v733_v14 = vmov 1.0|1.0   ;;  %v734_v15 = vmov 0.0  }
  0x55   : > { %709 = vsyncadd (%p991_p11), [#allocation6], 4294967232  ;;  %319 = vmatprep.mubr.bf16.mxu1 %v732_v2  ;;  %363 = vmatprep.mubr.bf16.mxu0 %v732_v2  ;;  %v275_v21 = vld [vmem:[%s972_s2] sm:$0xf]  ;;  %v274_v22 = vld [vmem:[#allocation5] sm:$0xf] }
  0x56   : > { %v209_v1 = vshrl.u32 %v208_v0, 7  ;;  %s485_s22 = sshll.u32 %s897_s29, 4  ;;  %s375_s30 = scalar_lea.sflag [#allocation4], %s897_s29 }
  0x57   : > { %s199_s27 = scalar_lea.vmem [#allocation7], %s485_s22  ;;  %s529_s4 = sshll.u32 (%p848_p8), %s777_s16, 1 }
  0x58   : > { %v222_v3 = vsub.s32 1, %v209_v1  ;;  %v218_v4 = vsub.s32 0, %v209_v1  ;;  %v210_v5 = vadd.s32 8, %v209_v1  ;;  %v211_v7 = vadd.s32 16, %v209_v1  ;;  %s383_s7 = ssub.s32 (%p848_p8), 3, %s529_s4 }
  0x59   : > { %v212_v8 = vadd.s32 24, %v209_v1  ;;  %v213_v11 = vadd.s32 32, %v209_v1  ;;  %v214_v12 = vadd.s32 40, %v209_v1  ;;  %v215_v13 = vadd.s32 48, %v209_v1  ;;  %p384_p6 = scmp.lt.s32.totalorder (%p848_p8), %s383_s7, 2 }
  0x5a   : > { %v223_v9 = vrot.slane %v207_v6, %v222_v3  ;;  %v219_v10 = vrot.slane %v207_v6, %v218_v4 }
  0x5c   : > { %vm225_vm0 = vcmp.eq.s32.totalorder %v209_v1, %v223_v9  ;;  %vm227_vm1 = vcmp.eq.s32.totalorder %v210_v5, %v223_v9  ;;  %vm224_vm2 = vcmp.eq.s32.totalorder %v209_v1, %v219_v10  ;;  %vm226_vm3 = vcmp.eq.s32.totalorder %v210_v5, %v219_v10 }
  0x5d   : > { %vm500_vm4 = vmpackc.low %vm227_vm1, %vm225_vm0  ;;  %vm229_vm5 = vcmp.eq.s32.totalorder %v211_v7, %v223_v9  ;;  %vm231_vm6 = vcmp.eq.s32.totalorder %v212_v8, %v223_v9  ;;  %vm228_vm7 = vcmp.eq.s32.totalorder %v211_v7, %v219_v10  ;;  %vm230_vm8 = vcmp.eq.s32.totalorder %v212_v8, %v219_v10 }
  0x5e   : > { %501 = vmatprep.subr.msk.bf16.mxu1 %vm500_vm4, %v733_v14  ;;  %515 = vmatprep.subr.msk.bf16.mxu0 %vm500_vm4, %v733_v14  ;;  %vm502_vm9 = vmpackc.low %vm226_vm3, %vm224_vm2  ;;  %vm233_vm10 = vcmp.eq.s32.totalorder %v213_v11, %v223_v9  ;;  %vm235_vm11 = vcmp.eq.s32.totalorder %v214_v12, %v223_v9  ;;  %vm237_vm13 = vcmp.eq.s32.totalorder %v215_v13, %v223_v9  ;;  %vm280_vm3 = vcmask 1041408  }
  0x5f   : > { %503 = vmatpush1.bf16.msk.msra.mxu1 %vm502_vm9, %v733_v14  ;;  %517 = vmatpush1.bf16.msk.msra.mxu0 %vm502_vm9, %v733_v14  ;;  %vm504_vm12 = vmpackc.low %vm231_vm6, %vm229_vm5  ;;  %vm236_vm14 = vcmp.eq.s32.totalorder %v215_v13, %v219_v10  ;;  %vm232_vm1 = vcmp.eq.s32.totalorder %v213_v11, %v219_v10  ;;  %vm234_vm4 = vcmp.eq.s32.totalorder %v214_v12, %v219_v10  ;;  %v499_v16 = vsel %vm237_vm13, 1.0, %v734_v15 }
  0x60   : > { %505 = vmatprep.subr.msk.bf16.mxu1 %vm504_vm12, %v733_v14  ;;  %519 = vmatprep.subr.msk.bf16.mxu0 %vm504_vm12, %v733_v14  ;;  %vm506_vm15 = vmpackc.low %vm230_vm8, %vm228_vm7  ;;  %v498_v17 = vsel %vm236_vm14, 1.0, %v734_v15  ;;  %v273_v18 = vpack.c.bf16 %v499_v16, %v499_v16  ;;  %vm276_vm5 = vcmask 424960  }
  0x61   : > { %vm508_vm0 = vmpackc.low %vm235_vm11, %vm233_vm10  ;;  %v272_v19 = vpack.c.bf16 %v498_v17, %v498_v17 }
  0x62   : > { %vm510_vm2 = vmpackc.low %vm234_vm4, %vm232_vm1 }
  0x63   : > { %507 = vmatpush1.bf16.msk.msra.mxu1 %vm506_vm15, %v733_v14  ;;  %521 = vmatpush1.bf16.msk.msra.mxu0 %vm506_vm15, %v733_v14  ;;  %v282_v20 = vsel %vm280_vm3, %v272_v19, 0 }
  0x64   : > { %509 = vmatprep.subr.msk.bf16.mxu1 %vm508_vm0, %v733_v14  ;;  %523 = vmatprep.subr.msk.bf16.mxu0 %vm508_vm0, %v733_v14 }
  0x67   : > { %511 = vmatpush1.bf16.msk.msra.mxu1 %vm510_vm2, %v733_v14  ;;  %525 = vmatpush1.bf16.msk.msra.mxu0 %vm510_vm2, %v733_v14 }
  0x68   : > { %512 = vmatprep.subr.msk.bf16.mxu1 %vm280_vm3, %v273_v18  ;;  %526 = vmatprep.subr.msk.bf16.mxu0 %vm280_vm3, %v273_v18 }
  0x6b   : > { %294 = vmatpush1.bf16.msra.mxu1 %v282_v20  ;;  %338 = vmatpush1.bf16.msra.mxu0 %v282_v20 }
  0x6e   : > { %513 = vmatmul.mubr.msk.bf16.vlgmr.msra.gmra.mrb[0].mxu1 %vm276_vm5, %v275_v21  ;;  %527 = vmatmul.mubr.msk.bf16.vlgmr.msra.gmra.mrb[0].mxu0 %vm276_vm5, %v274_v22 }
 0x13f   : > { %381 = sbr.rel (!%p848_p8) target bundleno = 353 (0x161), region = 44 }
 0x141   : > { %v321_v23 = vpop.f32.mrb[0].mxu1  ;;  %v365_v24 = vpop.f32.mrb[0].mxu0 }
 0x142   : > { %v366_v25 = vadd.f32 %v365_v24, %v321_v23  ;;  %v323_v26 = vpop.f32.mrb[1].mxu1  ;;  %v367_v27 = vpop.f32.mrb[1].mxu0 }
 0x143   : > { %v368_v28 = vadd.f32 %v367_v27, %v323_v26  ;;  %v325_v29 = vpop.f32.mrb[2].mxu1  ;;  %v369_v30 = vpop.f32.mrb[2].mxu0 }
 0x144   : > { %372 = vst [vmem:[%s199_s27] sm:$0xff] %v366_v25  ;;  %v326_v31 = vpop.f32.mrb[3].mxu1  ;;  %v370_v32 = vpop.f32.mrb[3].mxu0 }
 0x145   : > { %373 = vst [vmem:[%s199_s27 + $0x8] sm:$0xff] %v368_v28 }
 0x146   : > { %s999_s7 = smov (!%p384_p6, %s383_s7), 2 }
 0x147   : > { %s918_s8 = sshll.u32 %s999_s7, 7 }
 0x148   : > { %s388_s9 = ssub.s32 256, %s918_s8 }
 0x149   : > { %389 = vsyncadd %s375_s30, %s388_s9  ;;  %p531_p9 = scmp.ne.s32.totalorder %s918_s8, 0  ;;  %s538_s10 = sshll.u32 %s777_s16, 8 }
 0x14a   : > { %s928_s24 = scalar_lea.hbm %s973_s3, %s538_s10  ;;  %s395_s25 = sshll.u32 %s199_s27, 4  ;;  %s396_s25 = int_to_ptr.vmem [resolvable:$true] %s395_s25 }
 0x14b   : > { %s658_s28 = scalar_lea.vmem %s396_s25, %s918_s8  ;;  %s735_s26 = smov [#allocation7]  }
 0x14c   : > { %p659_p8 = scmp.ne.s32.totalorder %s396_s25, %s658_s28  ;;  %s662_s5 = sshll.u32 %s735_s26, 4  ;;  %s663_s5 = int_to_ptr.vmem [resolvable:$false] %s662_s5 }
 0x14d   : > { %s664_s6 = scalar_lea.vmem %s663_s5, 512  ;;  %p665_p0 = scmp.lt.s32.totalorder %s396_s25, %s663_s5 }
 0x14e   : > { %p660_p12 = pnand %p659_p8, %p531_p9  ;;  %p666_p5 = scmp.lt.s32.totalorder %s664_s6, %s658_s28 }
 0x150   : > { %p661_p13 = pneg %p660_p12  ;;  %p667_p10 = por %p666_p5, %p665_p0 }
 0x152   : > { %p668_p1 = pnand %p667_p10, %p661_p13 }
 0x154   : > { %671 = shalt.err (!%p668_p1)
}
 0x155   : > { %s672_s16 = scalar_lea.hbm %s928_s24, %s918_s8  ;;  %s676_s22 = scalar_lea.hbm %s973_s3, 384 }
 0x156   : > { %p673_p2 = scmp.ne.s32.totalorder %s928_s24, %s672_s16  ;;  %p677_p4 = scmp.lt.u32.totalorder %s928_s24, %s973_s3 }
 0x157   : > { %p678_p11 = scmp.lt.u32.totalorder %s676_s22, %s672_s16  ;;  %p680_p8 = scmp.lt.u32.totalorder %s672_s16, %s928_s24 }
 0x158   : > { %p674_p7 = pnand %p673_p2, %p531_p9 }
 0x159   : > { %p679_p6 = por %p678_p11, %p677_p4 }
 0x15a   : > { %p675_p3 = pneg %p674_p7 }
 0x15b   : > { %p681_p12 = por %p680_p8, %p679_p6 }
 0x15d   : > { %p682_p13 = pnand %p681_p12, %p675_p3 }
 0x15f   : > { %685 = shalt.err (!%p682_p13)
}
 0x160   : > { %398 = dma.vmem_to_hbm [thread:$0]  (%p531_p9), %s396_s25, %s918_s8, %s928_s24, %s375_s30  }
 0x161 PF: > { %s407_s7 = sand.u32 1, %s716_s12   ;;  %p992_p0 = scmp.ne.s32.totalorder %s978_s19, 0 }
 0x162   : > { %p993_p5 = scmp.ge.s32.totalorder %s728_s15, 2  ;;  %s408_s9 = scalar_lea.sflag [#allocation4], %s407_s7 }
 0x164   : > { %p557_p10 = pnand %p993_p5, %p992_p0 }
 0x166   : > { %711 = dma.done.wait (!%p557_p10), %s408_s9, 256  }
 0x167   : > { %713 = vsyncadd (!%p557_p10), %s408_s9, 4294967040  ;;  %p17_p1 = scmp.ge.s32.totalorder %s804_s23, 4   ;;  %s994_s12 = smov %s720_s13 }
 0x168   : > { %s995_s13 = smov %s724_s14  ;;  %s996_s14 = smov %s840_s11 }
 0x169   : > { %s997_s15 = smov %s804_s23  ;;  %19 = sbr.rel (!%p17_p1) target bundleno = 6 (0x6), region = 81 }
 0x170   :  { %413 = vsyncpa [#allocation3], 1 }
 0x171   :  { %415 = vsyncpa [#allocation3 + $0x1], 1 }
 0x172   :  { %416 = vsyncpa [#allocation6], 1 }
 0x173   :  { %417 = vsyncpa [#allocation4], 1 }
 0x174   :  { %419 = vsyncpa [#allocation4 + $0x1], 1 }

</bundles_post_ra>
